<compile_context>
chip_gen: v5e
topology: v5e:2x2
jax: 0.10.0
libtpu: 0.0.40
codegen_flags: <defaults>
</compile_context>

<pallas_src>
import functools

import jax
import jax.numpy as jnp
from jax.experimental import pallas as pl
from jax.experimental.pallas import tpu as pltpu


# ---------------------------------------------------------------------------
# Hardware-awareness helpers (all failures fall back to conservative choices).
# ---------------------------------------------------------------------------
def _vmem_capacity_bytes():
    try:
        return int(pltpu.get_tpu_info().vmem_capacity_bytes)
    except Exception:
        return 64 * 1024 * 1024  # conservative (v7x-sized)


def _has_bf16_valu():
    # v6e/v7x have bf16 VALUs; v5e (and older) do not.  Default: no.
    try:
        kind = jax.devices()[0].device_kind.lower()
    except Exception:
        return False
    return not any(s in kind for s in ("v5 lite", "v5e", "v5litepod", "v4", "v3", "v2"))


# ---------------------------------------------------------------------------
# Kernel bodies.
# ---------------------------------------------------------------------------
def _embed_vmem_kernel(ids_ref, table_ref, out_ref, *, scale, T, compute_in_f32):
    """Fast path: embedding table resident in VMEM, gather via in-VMEM row loads."""
    c = pl.program_id(0)
    j = pl.program_id(1)
    base = pl.multiple_of((c * pl.num_programs(1) + j) * T, T)

    @pl.loop(0, T // 8)
    def _(k8):
        k0 = pl.multiple_of(k8 * 8, 8)
        # Gather 8 rows, then one dense sublane-aligned (8, d_model) store.
        rows = jnp.concatenate(
            [table_ref[pl.ds(ids_ref[base + k0 + u], 1), :] for u in range(8)],
            axis=0,
        )
        if compute_in_f32:
            rows = rows.astype(jnp.float32)
        out_ref[pl.ds(k0, 8), :] = (rows * scale).astype(out_ref.dtype)


def _embed_dma_kernel(ids_ref, table_ref, out_ref, buf_ref, sem_ref, *,
                      scale, T, compute_in_f32):
    """Slow path: table stays in HBM; manual double-buffered row-DMA gather."""
    c = pl.program_id(0)
    j = pl.program_id(1)
    tiles_per_core = pl.num_programs(1)

    def start_fetch(tile_j, slot):
        # Issue T independent row DMAs table[id] -> buf[slot, k].
        # All T copies signal the single per-slot semaphore (aggregated wait).
        base = pl.multiple_of((c * tiles_per_core + tile_j) * T, T)

        @pl.loop(0, T // 8)
        def _(k8):
            k0 = pl.multiple_of(k8 * 8, 8)
            for u in range(8):  # manual x8 unroll: descriptor issue is the binding slot
                k = k0 + u
                tok = ids_ref[base + k]
                pltpu.make_async_copy(
                    table_ref.at[pl.ds(tok, 1)],
                    buf_ref.at[slot, pl.ds(k, 1)],
                    sem_ref.at[slot],
                ).start()

    # Prime the pipeline at the start of this core's tile range.
    @pl.when(j == 0)
    def _():
        start_fetch(0, 0)

    # Prefetch the next tile while we work on the current one.
    @pl.when(j + 1 < tiles_per_core)
    def _():
        start_fetch(j + 1, (j + 1) % 2)

    slot = j % 2
    # Aggregated wait: one (T, d_model)-sized descriptor decrements sem[slot]
    # by exactly the total bytes signaled by the T row copies above.
    pltpu.make_async_copy(
        table_ref.at[pl.ds(0, T)],
        buf_ref.at[slot],
        sem_ref.at[slot],
    ).wait()

    rows = buf_ref[slot]  # (T, d_model)
    if compute_in_f32:
        rows = rows.astype(jnp.float32)
    out_ref[...] = (rows * scale).astype(out_ref.dtype)


# ---------------------------------------------------------------------------
# Per-segment pallas_call builder.
# ---------------------------------------------------------------------------
def _embed_segment(ids, table, *, T, scale, use_hbm_gather, compute_in_f32, vmem_cap):
    n = int(ids.shape[0])
    vocab_size, d_model = table.shape
    itemsize = jnp.dtype(table.dtype).itemsize

    num_tiles = pl.cdiv(n, T)
    num_splits = 2 if num_tiles >= 2 else 1        # v7x: one half of tiles per TC
    tiles_per_core = pl.cdiv(num_tiles, num_splits)
    n_pad = num_splits * tiles_per_core * T
    if n_pad != n:
        ids = jnp.concatenate([ids, jnp.zeros((n_pad - n,), jnp.int32)])

    out_spec = pl.BlockSpec(
        (T, d_model), lambda c, j, ids_ref: (c * tiles_per_core + j, 0))

    out_bytes = 2 * T * d_model * itemsize          # double-buffered output block
    if use_hbm_gather:
        kernel = functools.partial(
            _embed_dma_kernel, scale=scale, T=T, compute_in_f32=compute_in_f32)
        in_specs = [pl.BlockSpec(memory_space=pl.ANY)]   # table stays in HBM
        scratch = [
            pltpu.VMEM((2, T, d_model), table.dtype),    # gather double-buffer
            pltpu.SemaphoreType.DMA((2,)),               # one aggregated sem per slot
        ]
        vmem_need = 2 * T * d_model * itemsize + out_bytes + (4 << 20)
    else:
        kernel = functools.partial(
            _embed_vmem_kernel, scale=scale, T=T, compute_in_f32=compute_in_f32)
        # Whole table resident in VMEM across the grid (constant index_map).
        in_specs = [pl.BlockSpec((vocab_size, d_model), lambda c, j, ids_ref: (0, 0))]
        scratch = []
        vmem_need = 2 * vocab_size * d_model * itemsize + out_bytes + (4 << 20)

    vmem_limit = int(min(max(vmem_need, 16 << 20), vmem_cap))

    out = pl.pallas_call(
        kernel,
        out_shape=jax.ShapeDtypeStruct((n_pad, d_model), table.dtype),
        grid_spec=pltpu.PrefetchScalarGridSpec(
            num_scalar_prefetch=1,               # ids -> SMEM before the grid runs
            grid=(num_splits, tiles_per_core),
            in_specs=in_specs,
            out_specs=out_spec,
            scratch_shapes=scratch,
        ),
        compiler_params=pltpu.CompilerParams(
            dimension_semantics=("parallel", "arbitrary"),
            vmem_limit_bytes=vmem_limit,
        ),
    )(ids, table)
    return out[:n]


# ---------------------------------------------------------------------------
# Public wrapper: out = table[x] * sqrt(d_model)
# ---------------------------------------------------------------------------
def word_embedding(x, table, *, tokens_per_tile=None, force_hbm_gather=None,
                   max_tokens_per_call=32768):
    vocab_size, d_model = table.shape
    orig_shape = x.shape
    # Clamp ids so untrusted inputs can never cause an out-of-bounds DMA/load.
    ids = jnp.clip(x.reshape(-1).astype(jnp.int32), 0, vocab_size - 1)
    n = int(ids.shape[0])
    itemsize = jnp.dtype(table.dtype).itemsize

    vmem_cap = _vmem_capacity_bytes()
    small_vmem = vmem_cap <= 64 * 1024 * 1024
    table_bytes = vocab_size * d_model * itemsize

    # VMEM-resident fast path for small/medium vocabularies.
    resident_threshold = (12 if small_vmem else 28) * 1024 * 1024
    use_hbm_gather = table_bytes > resident_threshold
    if force_hbm_gather is not None:
        use_hbm_gather = bool(force_hbm_gather)

    # Tokens per tile: generation-aware scratch budget (2x gather buf + 2x
    # pipelined output block per token).
    if tokens_per_tile is None:
        budget = (16 if small_vmem else 32) * 1024 * 1024
        per_tok = 4 * d_model * itemsize
        t_cap = max(8, (budget // per_tok) // 8 * 8)
        tokens_per_tile = int(min(512 if small_vmem else 1024, t_cap))
    T = int(tokens_per_tile)
    assert T % 8 == 0, "tokens_per_tile must be a multiple of 8"
    if use_hbm_gather and vocab_size >= 8:
        # Aggregated wait slices table[0:T]; keep T within the table extent.
        T = min(T, (vocab_size // 8) * 8)
    T = max(8, min(T, ((n + 7) // 8) * 8))

    # Bound the scalar-prefetch SMEM footprint by chunking long sequences.
    max_tokens_per_call = max(T, (int(max_tokens_per_call) // T) * T)

    compute_in_f32 = not (table.dtype == jnp.bfloat16 and _has_bf16_valu())
    scale = float(d_model) ** 0.5

    pieces = []
    for start in range(0, n, max_tokens_per_call):
        seg = ids[start:start + max_tokens_per_call]
        pieces.append(_embed_segment(
            seg, table, T=T, scale=scale, use_hbm_gather=use_hbm_gather,
            compute_in_f32=compute_in_f32, vmem_cap=vmem_cap))
    out_flat = pieces[0] if len(pieces) == 1 else jnp.concatenate(pieces, axis=0)
    return out_flat.reshape(*orig_shape, d_model)


if __name__ == "__main__":
    key = jax.random.PRNGKey(0)
    k_tab, k_ids, k_tab3, k_ids2, k_ids3 = jax.random.split(key, 5)

    # --- Test 1: small table -> VMEM-resident fast path, auto tile size.
    vocab, d_model = 64, 128
    table = jax.random.normal(k_tab, (vocab, d_model), dtype=jnp.float32)
    x = jax.random.randint(k_ids, (2, 8), 0, vocab, dtype=jnp.int32)
    out = jax.block_until_ready(word_embedding(x, table))
    ref = jnp.take(table, x.reshape(-1), axis=0).reshape(2, 8, d_model) * (float(d_model) ** 0.5)
    assert out.shape == (2, 8, d_model)
    assert jnp.allclose(out, ref, atol=1e-5, rtol=1e-5)

    # --- Test 2: ragged token count + tiny per-call cap (exercises the
    #     SMEM-bounding segmentation and the padding path).
    x2 = jax.random.randint(k_ids2, (3, 5), 0, vocab, dtype=jnp.int32)
    out2 = jax.block_until_ready(
        word_embedding(x2, table, tokens_per_tile=8, max_tokens_per_call=8))
    ref2 = jnp.take(table, x2.reshape(-1), axis=0).reshape(3, 5, d_model) * (float(d_model) ** 0.5)
    assert jnp.allclose(out2, ref2, atol=1e-5, rtol=1e-5)

    # --- Test 3: forced HBM-gather path (double-buffered row DMAs, aggregated
    #     per-slot semaphores, megacore-style (core, tile) grid).
    vocab3, d3 = 512, 256
    table3 = jax.random.normal(k_tab3, (vocab3, d3), dtype=jnp.float32)
    x3 = jax.random.randint(k_ids3, (2, 40), 0, vocab3, dtype=jnp.int32)
    out3 = jax.block_until_ready(
        word_embedding(x3, table3, tokens_per_tile=16, force_hbm_gather=True))
    ref3 = jnp.take(table3, x3.reshape(-1), axis=0).reshape(2, 40, d3) * (float(d3) ** 0.5)
    assert jnp.allclose(out3, ref3, atol=1e-4, rtol=1e-5)

    print("KERNEL_OK")
</pallas_src>

<mosaic_0001>
module attributes {stable_mosaic.version = 11 : i64} {
  func.func @_embed_vmem_kernel(%arg0: i32, %arg1: i32, %arg2: memref<16xi32, #tpu.memory_space<smem>>, %arg3: memref<64x128xf32, #tpu.memory_space<vmem>>, %arg4: memref<16x128xf32, #tpu.memory_space<vmem>>) attributes {dimension_semantics = [#tpu.dimension_semantics<parallel>, #tpu.dimension_semantics<arbitrary>], iteration_bounds = array<i64: 1, 1>, scalar_prefetch = 1 : i64, scratch_operands = 0 : i64, tpu.core_type = #tpu.core_type<tc>, window_params = [{pipeline_mode = #tpu.pipeline_mode<synchronous>, transform_indices = @transform_0, window_bounds = array<i64: 64, 128>}, {transform_indices = @transform_1, window_bounds = array<i64: 16, 128>}]} {
    %c1_i32 = arith.constant 1 : i32
    %0 = arith.muli %arg0, %c1_i32 : i32
    %1 = arith.addi %0, %arg1 : i32
    %c16_i32 = arith.constant 16 : i32
    %2 = arith.muli %1, %c16_i32 : i32
    %3 = tpu.assume_multiple %2, 16 : i32
    %c0_i32 = arith.constant 0 : i32
    %c2_i32 = arith.constant 2 : i32
    %4 = arith.addi %c0_i32, %c2_i32 : i32
    %c1_i32_0 = arith.constant 1 : i32
    scf.for %arg5 = %c0_i32 to %4 step %c1_i32_0  : i32 {
      %c1_i32_2 = arith.constant 1 : i32
      %5 = arith.muli %arg5, %c1_i32_2 : i32
      %c0_i32_3 = arith.constant 0 : i32
      %6 = arith.addi %c0_i32_3, %5 : i32
      %c8_i32 = arith.constant 8 : i32
      %7 = arith.muli %6, %c8_i32 : i32
      %8 = tpu.assume_multiple %7, 8 : i32
      %9 = arith.addi %3, %8 : i32
      %c0_i32_4 = arith.constant 0 : i32
      %10 = arith.addi %9, %c0_i32_4 : i32
      %11 = arith.index_cast %10 : i32 to index
      %12 = memref.load %arg2[%11] : memref<16xi32, #tpu.memory_space<smem>>
      %13 = arith.index_cast %12 : i32 to index
      %c0 = arith.constant 0 : index
      %14 = vector.load %arg3[%13, %c0] : memref<64x128xf32, #tpu.memory_space<vmem>>, vector<1x128xf32>
      %15 = arith.addi %3, %8 : i32
      %c1_i32_5 = arith.constant 1 : i32
      %16 = arith.addi %15, %c1_i32_5 : i32
      %17 = arith.index_cast %16 : i32 to index
      %18 = memref.load %arg2[%17] : memref<16xi32, #tpu.memory_space<smem>>
      %19 = arith.index_cast %18 : i32 to index
      %c0_6 = arith.constant 0 : index
      %20 = vector.load %arg3[%19, %c0_6] : memref<64x128xf32, #tpu.memory_space<vmem>>, vector<1x128xf32>
      %21 = arith.addi %3, %8 : i32
      %c2_i32_7 = arith.constant 2 : i32
      %22 = arith.addi %21, %c2_i32_7 : i32
      %23 = arith.index_cast %22 : i32 to index
      %24 = memref.load %arg2[%23] : memref<16xi32, #tpu.memory_space<smem>>
      %25 = arith.index_cast %24 : i32 to index
      %c0_8 = arith.constant 0 : index
      %26 = vector.load %arg3[%25, %c0_8] : memref<64x128xf32, #tpu.memory_space<vmem>>, vector<1x128xf32>
      %27 = arith.addi %3, %8 : i32
      %c3_i32 = arith.constant 3 : i32
      %28 = arith.addi %27, %c3_i32 : i32
      %29 = arith.index_cast %28 : i32 to index
      %30 = memref.load %arg2[%29] : memref<16xi32, #tpu.memory_space<smem>>
      %31 = arith.index_cast %30 : i32 to index
      %c0_9 = arith.constant 0 : index
      %32 = vector.load %arg3[%31, %c0_9] : memref<64x128xf32, #tpu.memory_space<vmem>>, vector<1x128xf32>
      %33 = arith.addi %3, %8 : i32
      %c4_i32 = arith.constant 4 : i32
      %34 = arith.addi %33, %c4_i32 : i32
      %35 = arith.index_cast %34 : i32 to index
      %36 = memref.load %arg2[%35] : memref<16xi32, #tpu.memory_space<smem>>
      %37 = arith.index_cast %36 : i32 to index
      %c0_10 = arith.constant 0 : index
      %38 = vector.load %arg3[%37, %c0_10] : memref<64x128xf32, #tpu.memory_space<vmem>>, vector<1x128xf32>
      %39 = arith.addi %3, %8 : i32
      %c5_i32 = arith.constant 5 : i32
      %40 = arith.addi %39, %c5_i32 : i32
      %41 = arith.index_cast %40 : i32 to index
      %42 = memref.load %arg2[%41] : memref<16xi32, #tpu.memory_space<smem>>
      %43 = arith.index_cast %42 : i32 to index
      %c0_11 = arith.constant 0 : index
      %44 = vector.load %arg3[%43, %c0_11] : memref<64x128xf32, #tpu.memory_space<vmem>>, vector<1x128xf32>
      %45 = arith.addi %3, %8 : i32
      %c6_i32 = arith.constant 6 : i32
      %46 = arith.addi %45, %c6_i32 : i32
      %47 = arith.index_cast %46 : i32 to index
      %48 = memref.load %arg2[%47] : memref<16xi32, #tpu.memory_space<smem>>
      %49 = arith.index_cast %48 : i32 to index
      %c0_12 = arith.constant 0 : index
      %50 = vector.load %arg3[%49, %c0_12] : memref<64x128xf32, #tpu.memory_space<vmem>>, vector<1x128xf32>
      %51 = arith.addi %3, %8 : i32
      %c7_i32 = arith.constant 7 : i32
      %52 = arith.addi %51, %c7_i32 : i32
      %53 = arith.index_cast %52 : i32 to index
      %54 = memref.load %arg2[%53] : memref<16xi32, #tpu.memory_space<smem>>
      %55 = arith.index_cast %54 : i32 to index
      %c0_13 = arith.constant 0 : index
      %56 = vector.load %arg3[%55, %c0_13] : memref<64x128xf32, #tpu.memory_space<vmem>>, vector<1x128xf32>
      %57 = tpu.concatenate %14, %20, %26, %32, %38, %44, %50, %56 in 0 : vector<1x128xf32>, vector<1x128xf32>, vector<1x128xf32>, vector<1x128xf32>, vector<1x128xf32>, vector<1x128xf32>, vector<1x128xf32>, vector<1x128xf32> -> vector<8x128xf32>
      %cst = arith.constant 11.3137083 : f32
      %58 = vector.broadcast %cst : f32 to vector<8x128xf32>
      %59 = arith.mulf %57, %58 : vector<8x128xf32>
      %60 = arith.index_cast %8 : i32 to index
      %c0_14 = arith.constant 0 : index
      %61 = vector.load %arg4[%60, %c0_14] : memref<16x128xf32, #tpu.memory_space<vmem>>, vector<8x128xf32>
      tpu.vector_store %arg4[%60, %c0_14], %59 {strides = array<i32>} : memref<16x128xf32, #tpu.memory_space<vmem>>, vector<8x128xf32>,
    }
    %c2_i32_1 = arith.constant 2 : i32
    return
  }
  func.func @transform_0(%arg0: i32, %arg1: i32, %arg2: memref<16xi32, #tpu.memory_space<smem>>) -> (i32, i32) {
    %c0_i32 = arith.constant 0 : i32
    %c0_i32_0 = arith.constant 0 : i32
    %c0_i32_1 = arith.constant 0 : i32
    return %c0_i32, %c0_i32_0 : i32, i32
  }
  func.func @transform_1(%arg0: i32, %arg1: i32, %arg2: memref<16xi32, #tpu.memory_space<smem>>) -> (i32, i32) {
    %c1_i32 = arith.constant 1 : i32
    %0 = arith.muli %arg0, %c1_i32 : i32
    %1 = arith.addi %0, %arg1 : i32
    %c0_i32 = arith.constant 0 : i32
    %c0_i32_0 = arith.constant 0 : i32
    return %1, %c0_i32 : i32, i32
  }
}

</mosaic_0001>

<bundles_post_ra>
// kernel: tpu_custom_call.1
= control target key start
LH: loop header
LB: loop body
LE: loop exit
PB: predicated region body
PF: predicated region fallthrough
CT: control target
= control target key end

     0   :  { %s241_s12 = smov [#allocation3]   ;;  %s297_s0 = inlined_call_operand.hbm [shape: s32[16], index: 0, kind: input, shape index: {}]   ;;  %s298_s1 = inlined_call_operand.hbm [shape: f32[64,128], index: 1, kind: input, shape index: {}]   ;;  %s299_s2 = inlined_call_operand.hbm [shape: f32[16,128], index: 2, kind: output, shape index: {}]  }
   0x1   :  { %s8_s11 = sshll.u32 %s297_s0, 4  ;;  %s9_s11 = int_to_ptr.hbm [resolvable:$true] %s8_s11 }
   0x2   :  { %11 = dma.hbm_to_smem %s9_s11, 16, %s241_s12, [#allocation2] }
   0x3   :  { %231 = dma.done.wait [#allocation2], 16 }
   0x4   :  { %232 = vsyncadd [#allocation2], 4294967280 }
   0x5   :  { %14 = sfence }
   0x6   :  { %15 = vsyncpa [#allocation5], 0 }
   0x7   :  { %16 = vsyncpa [#allocation6], 0  ;;  %s21_s15 = sshll.u32 %s298_s1, 4  ;;  %s242_s16 = smov [#allocation4]   ;;  %s22_s15 = int_to_ptr.hbm [resolvable:$true] %s21_s15 }
   0x8   :  { %s23_s17 = sshll.u32 %s242_s16, 4  ;;  %s243_s18 = smov 128   ;;  %s24_s17 = int_to_ptr.vmem [resolvable:$true] %s23_s17 }
   0x9   :  { %s244_s19 = smov 8  }
   0xa   :  { %29 = dma.hbm_to_vmem [thread:$0]  %s22_s15, 1024, %s24_s17, [#allocation5], %s243_s18, %s243_s18, %s244_s19  }
   0xb   :  { %233 = dma.done.wait [#allocation5], 1024  }
   0xc   :  { %234 = vsyncadd [#allocation5], 4294966272  ;;  %s270_s0 = smov 0  }
   0xd LB: > { %s276_s1 = sshll.u32 %s239_s0, 3  ;;  %vm98_vm0 = vcmask 1040384   ;;  %vm100_vm1 = vcmask 1041408   ;;  %vm102_vm2 = vcmask 1042432   ;;  %vm104_vm3 = vcmask 1043456   ;;  %s43_s0 = sadd.s32 1, %s239_s0   ;;  %s239_s0 = sphi %s270_s0, %s43_s0  }
   0xe   : > { %s46_s20 = sld [smem:[#allocation3 + %s276_s1]]  ;;  %s49_s21 = sadd.s32 1, %s276_s1  ;;  %vm106_vm4 = vcmask 1044480   ;;  %vm108_vm5 = vcmask 1045504   ;;  %vm110_vm6 = vcmask 1046528  }
   0xf   : > { %s50_s22 = sld [smem:[#allocation3 + %s49_s21]]  ;;  %s53_s23 = sadd.s32 2, %s276_s1 }
  0x10   : > { %s54_s24 = sld [smem:[#allocation3 + %s53_s23]]  ;;  %s57_s25 = sadd.s32 3, %s276_s1 }
  0x11   : > { %s58_s26 = sld [smem:[#allocation3 + %s57_s25]]  ;;  %s61_s27 = sadd.s32 4, %s276_s1 }
  0x12   : > { %s62_s28 = sld [smem:[#allocation3 + %s61_s27]]  ;;  %s65_s29 = sadd.s32 5, %s276_s1 }
  0x13   : > { %s66_s30 = sld [smem:[#allocation3 + %s65_s29]]  ;;  %s69_s3 = sadd.s32 6, %s276_s1 }
  0x14   : > { %s70_s4 = sld [smem:[#allocation3 + %s69_s3]]  ;;  %s73_s5 = sadd.s32 7, %s276_s1 }
  0x15   : > { %s47_s6 = scalar_lea.vmem [#allocation4], %s46_s20  ;;  %s51_s7 = scalar_lea.vmem [#allocation4], %s50_s22 }
  0x16   : > { %v48_v0 = vld [vmem:[%s47_s6] sm:$0x1]  ;;  %s74_s8 = sld [smem:[#allocation3 + %s73_s5]]  ;;  %s55_s9 = scalar_lea.vmem [#allocation4], %s54_s24 }
  0x17   : > { %v52_v1 = vld [vmem:[%s51_s7] sm:$0x1]  ;;  %s59_s10 = scalar_lea.vmem [#allocation4], %s58_s26  ;;  %s113_s15 = scalar_lea.vmem [#allocation7], %s276_s1 }
  0x18   : > { %v56_v2 = vld [vmem:[%s55_s9] sm:$0x1]  ;;  %v78_v3 = vrot.slane %v52_v1, 7  ;;  %s63_s11 = scalar_lea.vmem [#allocation4], %s62_s28  ;;  %p40_p0 = scmp.ge.s32.totalorder %s43_s0, 2  }
  0x19   : > { %v60_v4 = vld [vmem:[%s59_s10] sm:$0x1]  ;;  %v81_v5 = vrot.slane %v56_v2, 6  ;;  %s67_s12 = scalar_lea.vmem [#allocation4], %s66_s30  ;;  %s125_s20 = sshll.u32 (%p40_p0), %s299_s2, 4  ;;  %s126_s20 = int_to_ptr.hbm [resolvable:$true] %s125_s20 }
  0x1a   : > { %v64_v6 = vld [vmem:[%s63_s11] sm:$0x1]  ;;  %v84_v7 = vrot.slane %v60_v4, 5  ;;  %v99_v8 = vsel %vm98_vm0, %v48_v0, %v78_v3  ;;  %s71_s13 = scalar_lea.vmem [#allocation4], %s70_s4  ;;  %s245_s21 = smov (%p40_p0), [#allocation7]  }
  0x1b   : > { %v68_v9 = vld [vmem:[%s67_s12] sm:$0x1]  ;;  %v87_v10 = vrot.slane %v64_v6, 4  ;;  %v101_v11 = vsel %vm100_vm1, %v99_v8, %v81_v5  ;;  %s123_s22 = sshll.u32 (%p40_p0), %s245_s21, 4  ;;  %s124_s22 = int_to_ptr.vmem [resolvable:$true] %s123_s22 }
  0x1c   : > { %v72_v12 = vld [vmem:[%s71_s13] sm:$0x1]  ;;  %v90_v13 = vrot.slane %v68_v9, 3  ;;  %v103_v14 = vsel %vm102_vm2, %v101_v11, %v84_v7  ;;  %s75_s14 = scalar_lea.vmem [#allocation4], %s74_s8 }
  0x1d   : > { %v93_v15 = vrot.slane %v72_v12, 2  ;;  %v105_v16 = vsel %vm104_vm3, %v103_v14, %v87_v10  ;;  %v76_v17 = vld [vmem:[%s75_s14] sm:$0x1] }
  0x1e   : > { %v107_v18 = vsel %vm106_vm4, %v105_v16, %v90_v13  ;;  %v96_v19 = vrot.slane %v76_v17, 1 }
  0x1f   : > { %v109_v20 = vsel %vm108_vm5, %v107_v18, %v93_v15  ;;  %42 = sbr.rel (!%p40_p0) target bundleno = 13 (0xd), region = 45 }
  0x20   : > { %v111_v21 = vsel %vm110_vm6, %v109_v20, %v96_v19 }
  0x21   : > { %v112_v22 = vmul.f32 11.313708, %v111_v21 }
  0x23   : > { %114 = vst [vmem:[%s113_s15] sm:$0xff] %v112_v22 }
  0x24   :  { %131 = dma.vmem_to_hbm [thread:$0]  %s124_s22, 256, %s126_s20, [#allocation6], %s243_s18, %s243_s18, %s244_s19  }
  0x25   :  { %235 = dma.done.wait [#allocation6], 256  }
  0x26   :  { %236 = vsyncadd [#allocation6], 4294967040 }
  0x27   :  { %136 = vsyncpa [#allocation5], 1 }
  0x28   :  { %137 = vsyncpa [#allocation6], 1 }

</bundles_post_ra>
